<compile_context>
chip_gen: v7x
topology: tpu7x:2x2x1
jax: 0.10.0
libtpu: 0.0.40
codegen_flags: <defaults>
</compile_context>

<pallas_src>
import functools

import jax
import jax.numpy as jnp
from jax.experimental import pallas as pl
from jax.experimental.pallas import tpu as pltpu


def _round_up(v, m):
    return ((v + m - 1) // m) * m


@functools.lru_cache(maxsize=None)
def _lane_roll_direction():
    """One-time probe of the lane rotate used by the single-store fast path.

    Returns +1 if pltpu.roll follows jnp.roll semantics (out[i] = x[(i - s) % n]),
            -1 if the rotation direction is inverted,
             0 if the lane roll is unavailable (caller uses the 2-store path).
    """

    def probe_kernel(x_ref, o_ref):
        o_ref[...] = pltpu.roll(x_ref[...], 1, 2)

    try:
        x = jnp.arange(8 * 128, dtype=jnp.float32).reshape(1, 8, 128)
        out = pl.pallas_call(
            probe_kernel,
            out_shape=jax.ShapeDtypeStruct((1, 8, 128), jnp.float32),
        )(x)
        row = jax.device_get(out)[0, 0]
        if row[0] == 127.0 and row[1] == 0.0:
            return 1
        if row[0] == 1.0 and row[127] == 0.0:
            return -1
        return 0
    except Exception:
        return 0


def _shift_rows_roll(rows, t, shift_len, direction, shift_left):
    """Full-T-width shifted value for one channel group.

    Lane rotate goes to the XLU slot and the mask select to the VPU, so the
    caller can issue a single unmasked, lane-dense store per group instead of
    a masked shifted store plus an L-wide zero store.
    """
    L = shift_len
    if shift_left:
        amt = (t - L) if direction == 1 else L        # out[i] = rows[i + L], i < t - L
    else:
        amt = L if direction == 1 else (t - L)        # out[i] = rows[i - L], i >= L
    rolled = pltpu.roll(rows, amt, 2)
    lane = jax.lax.broadcasted_iota(jnp.int32, rolled.shape, 2)
    keep = (lane < t - L) if shift_left else (lane >= L)
    return jnp.where(keep, rolled, jnp.zeros_like(rolled))


def _shift_kernel_prefix(x_ref, o_ref, *, g1, g2, shift_len, roll_direction):
    """Block (bn, c_blk, T): rows [0, g1) shift left, [g1, g2) shift right,
    [g2, c_blk) identity (sublane-alignment padding rows)."""
    bn, c_blk, t = x_ref.shape
    L = shift_len
    dt = o_ref.dtype

    if roll_direction != 0:
        # One full-lane-width store per shifted group.
        if g1 > 0:
            o_ref[:, 0:g1, :] = _shift_rows_roll(
                x_ref[:, 0:g1, :], t, L, roll_direction, True)
        if g2 > g1:
            o_ref[:, g1:g2, :] = _shift_rows_roll(
                x_ref[:, g1:g2, :], t, L, roll_direction, False)
    else:
        # Fallback: shifted slab + L-wide zero slab (direct ref slices).
        if g1 > 0:
            o_ref[:, 0:g1, 0:t - L] = x_ref[:, 0:g1, L:t]
            o_ref[:, 0:g1, t - L:t] = jnp.zeros((bn, g1, L), dt)
        if g2 > g1:
            o_ref[:, g1:g2, L:t] = x_ref[:, g1:g2, 0:t - L]
            o_ref[:, g1:g2, 0:L] = jnp.zeros((bn, g2 - g1, L), dt)
    if c_blk > g2:
        # Sublane-padding rows: plain ref-slice copy (no full-block value).
        o_ref[:, g2:c_blk, :] = x_ref[:, g2:c_blk, :]


def _shift_kernel_ctiled(x_ref, o_ref, *, chunks_left, shift_len, roll_direction):
    """Block (1, cc, T); grid (batch, channel_chunk).

    Chunks [0, chunks_left) hold left-shift channels, chunks
    [chunks_left, 2*chunks_left) hold right-shift channels; every chunk lies
    entirely inside one region, so the split is static and pl.when only picks
    the shift direction."""
    bn, cc, t = x_ref.shape
    L = shift_len
    dt = o_ref.dtype
    ci = pl.program_id(1)

    if roll_direction != 0:
        @pl.when(ci < chunks_left)
        def _():
            o_ref[...] = _shift_rows_roll(x_ref[...], t, L, roll_direction, True)

        @pl.when(ci >= chunks_left)
        def _():
            o_ref[...] = _shift_rows_roll(x_ref[...], t, L, roll_direction, False)
    else:
        @pl.when(ci < chunks_left)
        def _():
            o_ref[:, :, 0:t - L] = x_ref[:, :, L:t]
            o_ref[:, :, t - L:t] = jnp.zeros((bn, cc, L), dt)

        @pl.when(ci >= chunks_left)
        def _():
            o_ref[:, :, L:t] = x_ref[:, :, 0:t - L]
            o_ref[:, :, 0:L] = jnp.zeros((bn, cc, L), dt)


def shift_token_mixer(x, shift_div=8, shift_len=1, *, max_block_bytes=3 * 1024 * 1024):
    """Pallas implementation of ShfitTokenMixerLayer.forward (partial_shfit).

    max_block_bytes caps the *padded* VMEM size of one block per buffer
    (3 MiB default keeps 4 double-buffered blocks under v5e's 16 MiB scoped
    default; v6e can comfortably use 4-6 MiB).  Donate x at the jit boundary
    for a true in-place update of the untouched channels.
    """
    n, c, t = x.shape
    g = c // shift_div
    if g == 0:
        return x  # module copies x through unchanged
    if not (0 < shift_len < t):
        raise ValueError("shift_len must satisfy 0 < shift_len < T")

    itemsize = jnp.dtype(x.dtype).itemsize
    sub_mult = 8 * max(1, 4 // itemsize)       # sublane tile: 8 f32 / 16 bf16 / 32 int8
    t_pad = _round_up(t, 128)                  # lane padding: VMEM tiles are (sub, 128)
    g1 = min(g, c)
    g2 = min(2 * g, c)                         # channels [0, g2) actually change
    c_blk = min(c, _round_up(g2, sub_mult))    # sublane-aligned channel prefix

    # Lane-aligned T -> single unmasked store per group via roll+mask.
    roll_direction = _lane_roll_direction() if t % 128 == 0 else 0

    # What one batch row of the prefix block really costs in VMEM (padded).
    prefix_row_bytes = c_blk * t_pad * itemsize

    if prefix_row_bytes > max_block_bytes and g1 == g and g2 == 2 * g and g % sub_mult == 0:
        # ---- Channel-tiled path (large C*T): bound block size with a second
        # grid axis over channel chunks (also gives the v7x megacore more
        # parallel grid steps).  T stays untiled because the shift crosses T.
        cc = sub_mult
        for cand in range(sub_mult, g + 1, sub_mult):
            if g % cand == 0 and cand * t_pad * itemsize <= max_block_bytes:
                cc = cand
        chunks_left = g // cc
        grid = (n, 2 * chunks_left)
        block_bytes = cc * t_pad * itemsize
        kernel = functools.partial(_shift_kernel_ctiled, chunks_left=chunks_left,
                                   shift_len=shift_len, roll_direction=roll_direction)
        in_specs = [pl.BlockSpec((1, cc, t), lambda b, ci: (b, ci, 0))]
        out_specs = pl.BlockSpec((1, cc, t), lambda b, ci: (b, ci, 0))
        dims = ("parallel", "parallel")
        bytes_touched = 2 * n * (2 * g) * t * itemsize
    else:
        # ---- Prefix path: one sublane-aligned channel prefix per block, fold
        # batch rows up to the padded budget while preferring >= 4 grid steps
        # (>= 2 per v7x TensorCore) so the pipeline double-buffers everywhere.
        # TODO(synk): if g is not sublane-aligned and a single prefix row still
        #             exceeds max_block_bytes, the block can exceed the scoped
        #             VMEM budget (fails at compile time, not silently).
        bn = 1
        for min_steps in (4, 2, 1):
            best = 0
            for d in range(1, n + 1):
                if n % d == 0 and d * prefix_row_bytes <= max_block_bytes and n // d >= min_steps:
                    best = d
            if best:
                bn = best
                break
        grid = (n // bn,)
        block_bytes = bn * prefix_row_bytes
        kernel = functools.partial(_shift_kernel_prefix, g1=g1, g2=g2,
                                   shift_len=shift_len, roll_direction=roll_direction)
        in_specs = [pl.BlockSpec((bn, c_blk, t), lambda i: (i, 0, 0))]
        out_specs = pl.BlockSpec((bn, c_blk, t), lambda i: (i, 0, 0))
        dims = ("parallel",)
        bytes_touched = 2 * n * c_blk * t * itemsize

    # in + out double-buffered = 4 blocks; 8x gives headroom and stays under
    # every generation's physical VMEM (v7x: 64 MiB per TensorCore).
    vmem_limit = int(min(56 * 1024 * 1024, max(24 * 1024 * 1024, 8 * block_bytes)))

    return pl.pallas_call(
        kernel,
        out_shape=jax.ShapeDtypeStruct((n, c, t), x.dtype),
        grid_spec=pltpu.PrefetchScalarGridSpec(
            num_scalar_prefetch=0,
            grid=grid,
            in_specs=in_specs,
            out_specs=out_specs,
        ),
        # Channels beyond the covered prefix are never read/written; they are
        # preserved from x through the alias (or XLA's defensive copy when x
        # is not donated).
        input_output_aliases={0: 0},
        compiler_params=pltpu.CompilerParams(
            dimension_semantics=dims,
            vmem_limit_bytes=vmem_limit,
        ),
        # Pure-bandwidth op: flops=0 lets XLA overlap it with neighbours.
        cost_estimate=pl.CostEstimate(
            flops=0, transcendentals=0, bytes_accessed=bytes_touched),
    )(x)


def shift_token_mixer_ref(x, shift_div=8, shift_len=1):
    """Pure-JAX reference mirroring the PyTorch partial_shfit exactly."""
    n, c, t = x.shape
    g = c // shift_div
    out = jnp.zeros_like(x)
    out = out.at[:, 0:g, : t - shift_len].set(x[:, 0:g, shift_len:])
    out = out.at[:, g:2 * g, shift_len:].set(x[:, g:2 * g, : t - shift_len])
    out = out.at[:, 2 * g:, :].set(x[:, 2 * g:, :])
    return out


if __name__ == "__main__":
    key = jax.random.PRNGKey(0)

    # (N, C, T, shift_div, shift_len, forced max_block_bytes or None)
    cases = [
        (2, 16, 32, 8, 1, None),        # small T          -> two-store fallback path
        (2, 16, 128, 8, 1, None),       # lane-aligned T   -> roll + single-store path
        (2, 64, 32, 4, 2, 8 * 1024),    # forced channel tiling, fallback stores
        (2, 64, 128, 4, 1, 8 * 1024),   # forced channel tiling, roll stores
    ]
    for idx, (N, C, T, sdiv, slen, mbb) in enumerate(cases):
        key, sub = jax.random.split(key)
        x = jax.random.normal(sub, (N, C, T), dtype=jnp.float32)
        ref = shift_token_mixer_ref(x, sdiv, slen)
        kwargs = {} if mbb is None else {"max_block_bytes": mbb}
        out = jax.block_until_ready(shift_token_mixer(x, sdiv, slen, **kwargs))
        assert out.shape == ref.shape and out.dtype == ref.dtype, f"case {idx}: shape/dtype"
        assert jnp.array_equal(out, ref), f"case {idx}: values mismatch vs reference"

    print("KERNEL_OK")
</pallas_src>

<mosaic_0001>
module attributes {stable_mosaic.version = 11 : i64} {
  func.func @_shift_kernel_prefix(%arg0: i32, %arg1: memref<1x8x32xf32, #tpu.memory_space<vmem>>, %arg2: memref<1x8x32xf32, #tpu.memory_space<vmem>>) attributes {dimension_semantics = [#tpu.dimension_semantics<parallel>], iteration_bounds = array<i64: 2>, scalar_prefetch = 0 : i64, scratch_operands = 0 : i64, tpu.core_type = #tpu.core_type<tc>, window_params = [{transform_indices = @transform_0, window_bounds = array<i64: 1, 8, 32>}, {transform_indices = @transform_1, window_bounds = array<i64: 1, 8, 32>}]} {
    %c0 = arith.constant 0 : index
    %c0_0 = arith.constant 0 : index
    %c1 = arith.constant 1 : index
    %0 = vector.load %arg1[%c0, %c0_0, %c1] : memref<1x8x32xf32, #tpu.memory_space<vmem>>, vector<1x2x31xf32>
    %c0_1 = arith.constant 0 : index
    %c0_2 = arith.constant 0 : index
    %c0_3 = arith.constant 0 : index
    %1 = vector.load %arg2[%c0_1, %c0_2, %c0_3] : memref<1x8x32xf32, #tpu.memory_space<vmem>>, vector<1x2x31xf32>
    tpu.vector_store %arg2[%c0_1, %c0_2, %c0_3], %0 {strides = array<i32>} : memref<1x8x32xf32, #tpu.memory_space<vmem>>, vector<1x2x31xf32>,
    %cst = arith.constant 0.000000e+00 : f32
    %2 = vector.broadcast %cst : f32 to vector<1x2x1xf32>
    %c0_4 = arith.constant 0 : index
    %c0_5 = arith.constant 0 : index
    %c31 = arith.constant 31 : index
    %3 = vector.load %arg2[%c0_4, %c0_5, %c31] : memref<1x8x32xf32, #tpu.memory_space<vmem>>, vector<1x2x1xf32>
    tpu.vector_store %arg2[%c0_4, %c0_5, %c31], %2 {strides = array<i32>} : memref<1x8x32xf32, #tpu.memory_space<vmem>>, vector<1x2x1xf32>,
    %c0_6 = arith.constant 0 : index
    %c2 = arith.constant 2 : index
    %c0_7 = arith.constant 0 : index
    %4 = vector.load %arg1[%c0_6, %c2, %c0_7] : memref<1x8x32xf32, #tpu.memory_space<vmem>>, vector<1x2x31xf32>
    %c0_8 = arith.constant 0 : index
    %c2_9 = arith.constant 2 : index
    %c1_10 = arith.constant 1 : index
    %5 = vector.load %arg2[%c0_8, %c2_9, %c1_10] : memref<1x8x32xf32, #tpu.memory_space<vmem>>, vector<1x2x31xf32>
    tpu.vector_store %arg2[%c0_8, %c2_9, %c1_10], %4 {strides = array<i32>} : memref<1x8x32xf32, #tpu.memory_space<vmem>>, vector<1x2x31xf32>,
    %cst_11 = arith.constant 0.000000e+00 : f32
    %6 = vector.broadcast %cst_11 : f32 to vector<1x2x1xf32>
    %c0_12 = arith.constant 0 : index
    %c2_13 = arith.constant 2 : index
    %c0_14 = arith.constant 0 : index
    %7 = vector.load %arg2[%c0_12, %c2_13, %c0_14] : memref<1x8x32xf32, #tpu.memory_space<vmem>>, vector<1x2x1xf32>
    tpu.vector_store %arg2[%c0_12, %c2_13, %c0_14], %6 {strides = array<i32>} : memref<1x8x32xf32, #tpu.memory_space<vmem>>, vector<1x2x1xf32>,
    %c0_15 = arith.constant 0 : index
    %c4 = arith.constant 4 : index
    %c0_16 = arith.constant 0 : index
    %8 = vector.load %arg1[%c0_15, %c4, %c0_16] : memref<1x8x32xf32, #tpu.memory_space<vmem>>, vector<1x4x32xf32>
    %c0_17 = arith.constant 0 : index
    %c4_18 = arith.constant 4 : index
    %c0_19 = arith.constant 0 : index
    %9 = vector.load %arg2[%c0_17, %c4_18, %c0_19] : memref<1x8x32xf32, #tpu.memory_space<vmem>>, vector<1x4x32xf32>
    tpu.vector_store %arg2[%c0_17, %c4_18, %c0_19], %8 {strides = array<i32>} : memref<1x8x32xf32, #tpu.memory_space<vmem>>, vector<1x4x32xf32>,
    return
  }
  func.func @transform_0(%arg0: i32) -> (i32, i32, i32) {
    %c0_i32 = arith.constant 0 : i32
    %c0_i32_0 = arith.constant 0 : i32
    %c0_i32_1 = arith.constant 0 : i32
    return %arg0, %c0_i32, %c0_i32_0 : i32, i32, i32
  }
  func.func @transform_1(%arg0: i32) -> (i32, i32, i32) {
    %c0_i32 = arith.constant 0 : i32
    %c0_i32_0 = arith.constant 0 : i32
    %c0_i32_1 = arith.constant 0 : i32
    return %arg0, %c0_i32, %c0_i32_0 : i32, i32, i32
  }
}

</mosaic_0001>

<bundles_post_ra>
// kernel: tpu_custom_call.1
= control target key start
LH: loop header
LB: loop body
LE: loop exit
PB: predicated region body
PF: predicated region fallthrough
CT: control target
= control target key end

     0   :  { %6 = vsyncpa [#allocation3], 0  ;;  %s578_s0 = inlined_call_operand.hbm [shape: f32[2,16,32], index: 0, kind: input, shape index: {}, may-alias: {0,1}]   ;;  %s579_s1 = inlined_call_operand.hbm [shape: f32[2,16,32], index: 1, kind: output, shape index: {}, may-alias: {0,1}]  }
   0x1   :  { %8 = vsyncpa [#allocation3 + $0x1], 0 }
   0x2   :  { %9 = vsyncpa [#allocation4], 0 }
   0x3   :  { %11 = vsyncpa [#allocation4 + $0x1], 0  ;;  %s417_s6 = smov 0   ;;  %s419_s7 = smov 0  }
   0x4   :  { %s421_s8 = smov 0   ;;  %s423_s9 = smov 0  }
   0x5 LB: > { %s438_s10 = sadd.s32 4294967295, %s400_s9   ;;  %s239_s11 = sadd.s32 4294967294, %s400_s9   ;;  %s400_s9 = sphi %s423_s9, %s594_s9   ;;  %s396_s8 = sphi %s421_s8, %s593_s8   ;;  %s392_s7 = sphi %s419_s7, %s592_s7   ;;  %s388_s6 = sphi %s417_s6, %s591_s6  }
   0x6   : > { %s442_s12 = sadd.s32 1, %s400_s9   ;;  %s24_s13 = sadd.s32 1, %s396_s8 }
   0x7   : > { %s21_s14 = ssub.s32 %s400_s9, %s442_s12  ;;  %p31_p0 = scmp.ne.s32.totalorder %s396_s8, %s392_s7 }
   0x8   : > { %p22_p1 = scmp.eq.s32.totalorder %s21_s14, 0  ;;  %p32_p2 = scmp.eq.s32.totalorder %s400_s9, 0 }
   0x9   : > { %p37_p3 = scmp.ne.s32.totalorder %s392_s7, %s388_s6  ;;  %p38_p4 = scmp.eq.s32.totalorder %s438_s10, 0 }
   0xa   : > { %s454_s15 = scalar_select %p22_p1, %s396_s8, %s24_s13  }
   0xb   : > { %p456_p5 = por %p32_p2, %p31_p0  ;;  %p460_p6 = por %p38_p4, %p37_p3 }
   0xc   : > { %p61_p7 = scmp.eq.s32.totalorder %s438_s10, 1  ;;  %p67_p8 = scmp.eq.s32.totalorder %s239_s11, 1 }
   0xd   : > { %p267_p10 = scmp.lt.s32.totalorder %s400_s9, 2  ;;  %s87_s20 = sand.u32 1, %s396_s8  }
   0xe   : > { %p467_p11 = por %p61_p7, %p31_p0  ;;  %p471_p12 = por %p67_p8, %p37_p3 }
   0xf   : > { %s253_s21 = sshll.u32 %s400_s9, 8  ;;  %s242_s22 = sshll.u32 %s87_s20, 3 }
  0x10   : > { %s583_s18 = scalar_select %p467_p11, 1, 0 }
  0x11   : > { %s584_s19 = scalar_select %p471_p12, 1, 0 }
  0x12   : > { %s480_s25 = scalar_lea.hbm %s578_s0, %s253_s21  ;;  %s91_s26 = scalar_lea.vmem [#allocation2], %s242_s22 }
  0x13   : > { %s99_s27 = sshll.u32 %s91_s26, 4  ;;  %p484_p13 = pnand %p267_p10, %p456_p5  ;;  %s488_s27 = int_to_ptr.vmem [resolvable:$true] %s99_s27 }
  0x14   : > { %s88_s29 = scalar_lea.sflag [#allocation3], %s87_s20  ;;  %s304_s30 = scalar_lea.hbm %s480_s25, 128 }
  0x15   : > { %p305_p2 = scmp.ne.s32.totalorder %s480_s25, %s304_s30  ;;  %p306_p3 = pneg %p484_p13 }
  0x16   : > { %s309_s4 = scalar_lea.hbm %s578_s0, 512  ;;  %p310_p5 = scmp.lt.u32.totalorder %s480_s25, %s578_s0 }
  0x17   : > { %p307_p4 = pnand %p306_p3, %p305_p2  ;;  %p311_p8 = scmp.lt.u32.totalorder %s309_s4, %s304_s30 }
  0x18   : > { %p313_p9 = scmp.lt.u32.totalorder %s304_s30, %s480_s25 }
  0x19   : > { %p308_p7 = pneg %p307_p4  ;;  %p312_p10 = por %p311_p8, %p310_p5 }
  0x1b   : > { %p314_p0 = por %p313_p9, %p312_p10 }
  0x1d   : > { %p315_p1 = pnand %p314_p0, %p308_p7 }
  0x1f   : > { %318 = shalt.err (!%p315_p1)
}
  0x20   : > { %s319_s13 = scalar_lea.vmem %s488_s27, 128  ;;  %s402_s14 = smov [#allocation2]  }
  0x21   : > { %p320_p2 = scmp.ne.s32.totalorder %s488_s27, %s319_s13  ;;  %s324_s16 = sshll.u32 %s402_s14, 4  ;;  %s325_s16 = int_to_ptr.vmem [resolvable:$false] %s324_s16 }
  0x22   : > { %s326_s20 = scalar_lea.vmem %s325_s16, 256  ;;  %p327_p11 = scmp.lt.s32.totalorder %s488_s27, %s325_s16 }
  0x23   : > { %p322_p4 = pnand %p320_p2, %p306_p3  ;;  %p328_p5 = scmp.lt.s32.totalorder %s326_s20, %s319_s13 }
  0x25   : > { %p323_p12 = pneg %p322_p4  ;;  %p329_p8 = por %p328_p5, %p327_p11 }
  0x27   : > { %p330_p9 = pnand %p329_p8, %p323_p12 }
  0x29   : > { %333 = shalt.err (!%p330_p9)
}
  0x2a   : > { %262 = dma.hbm_to_vmem [thread:$0]  (!%p484_p13), %s480_s25, 128, %s488_s27, %s88_s29  }
  0x2b   : > { %p586_p0 = scmp.lt.s32.totalorder %s400_s9, 3  ;;  %p587_p1 = scmp.ge.s32.totalorder %s400_s9, 1 }
  0x2d   : > { %p105_p3 = pnand %p587_p1, %p586_p0 }
  0x2e   : > { %s522_s21 = sand.u32 (!%p105_p3), 1, %s392_s7  }
  0x2f   : > { %108 = sbr.rel (%p105_p3) target bundleno = 191 (0xbf), region = 24  ;;  %s246_s22 = sshll.u32 (!%p105_p3), %s522_s21, 3 }
  0x30   : > { %s111_s23 = scalar_lea.sflag (!%p105_p3), [#allocation3], %s522_s21  ;;  %s114_s24 = scalar_lea.vmem (!%p105_p3), [#allocation2], %s246_s22 }
  0x36   : > { %379 = dma.done.wait (%p460_p6), %s111_s23, 128  }
  0x37   : > { %381 = vsyncadd (%p460_p6), %s111_s23, 4294967168  ;;  %vm152_vm0 = vcmask 257024   ;;  %v133_v0 = vld [vmem:[%s114_s24] sm:$0x3]  ;;  %v151_v1 = vld [vmem:[%s114_s24 + $0x4] sm:$0xf] }
  0x38   : > { %s403_s25 = smov 127   ;;  %s132_s26 = scalar_lea.vmem [#allocation5], %s246_s22  ;;  %v142_v2 = vld [vmem:[%s114_s24 + $0x2] sm:$0x3]  ;;  %vm138_vm1 = vcmask 246784   ;;  %vm140_vm2 = vcmask 255224  }
  0x39   : > { %135 = vrot.lane.b32.xlu0 %v133_v0, %s403_s25  ;;  %153 = vst.msk [vmem:[%s132_s26 + $0x4] sm:$0xf] %vm152_vm0, %v151_v1  ;;  %s404_s27 = smov 1   ;;  %s254_s28 = sshll.u32 %s438_s10, 8  ;;  %v405_v4 = vmov 0.0   ;;  %vm147_vm3 = vcmask 254984  }
  0x3a   : > { %s169_s17 = sshll.u32 %s132_s26, 4  ;;  %vm149_vm4 = vcmask 1024   ;;  %s534_s2 = scalar_lea.hbm %s579_s1, %s254_s28  ;;  %s536_s17 = int_to_ptr.vmem [resolvable:$true] %s169_s17 }
  0x3b   : > { %s155_s3 = scalar_lea.sflag [#allocation4], %s522_s21  ;;  %s334_s10 = scalar_lea.vmem %s536_s17, 128 }
  0x3c   : > { %p335_p6 = scmp.ne.s32.totalorder %s536_s17, %s334_s10  ;;  %p588_p11 = scmp.ne.s32.totalorder %s583_s18, 0 }
  0x3d   : > { %144 = vrot.lane.b32.xlu0 %v142_v2, %s404_s27  ;;  %s406_s4 = smov [#allocation5]  }
  0x3e   : > { %p336_p12 = pnand %p335_p6, %p588_p11  ;;  %s338_s5 = sshll.u32 %s406_s4, 4  ;;  %s339_s5 = int_to_ptr.vmem [resolvable:$false] %s338_s5 }
  0x3f   : > { %s340_s11 = scalar_lea.vmem %s339_s5, 256  ;;  %p341_p7 = scmp.lt.s32.totalorder %s536_s17, %s339_s5 }
  0x40   : > { %p337_p13 = pneg %p336_p12  ;;  %p342_p10 = scmp.lt.s32.totalorder %s340_s11, %s334_s10 }
  0x42   : > { %p343_p2 = por %p342_p10, %p341_p7 }
  0x44   : > { %p344_p4 = pnand %p343_p2, %p337_p13 }
  0xab   : > { %v136_v3 = vpop.permute.xlu0 %135 }
  0xac   : > { %139 = vst.msk [vmem:[%s132_s26] sm:$0x3] %vm138_vm1, %v136_v3 }
  0xad   : > { %141 = vst.msk [vmem:[%s132_s26] sm:$0x3] %vm140_vm2, %v405_v4 }
  0xaf   : > { %v145_v5 = vpop.permute.xlu0 %144 }
  0xb0   : > { %148 = vst.msk [vmem:[%s132_s26 + $0x2] sm:$0x3] %vm147_vm3, %v145_v5 }
  0xb1   : > { %150 = vst.msk [vmem:[%s132_s26 + $0x2] sm:$0x3] %vm149_vm4, %v405_v4 }
  0xb2   : > { %347 = shalt.err (!%p344_p4)
}
  0xb3   : > { %s348_s13 = scalar_lea.hbm %s534_s2, 128  ;;  %s352_s20 = scalar_lea.hbm %s579_s1, 512 }
  0xb4   : > { %p349_p5 = scmp.ne.s32.totalorder %s534_s2, %s348_s13  ;;  %p353_p0 = scmp.lt.u32.totalorder %s534_s2, %s579_s1 }
  0xb5   : > { %p354_p1 = scmp.lt.u32.totalorder %s352_s20, %s348_s13  ;;  %p356_p6 = scmp.lt.u32.totalorder %s348_s13, %s534_s2 }
  0xb6   : > { %p350_p8 = pnand %p349_p5, %p588_p11 }
  0xb7   : > { %p355_p3 = por %p354_p1, %p353_p0 }
  0xb8   : > { %p351_p9 = pneg %p350_p8 }
  0xb9   : > { %p357_p12 = por %p356_p6, %p355_p3 }
  0xbb   : > { %p358_p13 = pnand %p357_p12, %p351_p9 }
  0xbd   : > { %361 = shalt.err (!%p358_p13)
}
  0xbe   : > { %257 = dma.vmem_to_hbm [thread:$0]  (%p588_p11), %s536_s17, 128, %s534_s2, %s155_s3  }
  0xbf PF: > { %s181_s23 = sand.u32 1, %s388_s6   ;;  %p589_p7 = scmp.ne.s32.totalorder %s584_s19, 0 }
  0xc0   : > { %p590_p10 = scmp.ge.s32.totalorder %s400_s9, 2  ;;  %s182_s24 = scalar_lea.sflag [#allocation4], %s181_s23 }
  0xc2   : > { %p264_p2 = pnand %p590_p10, %p589_p7 }
  0xc4   : > { %383 = dma.done.wait (!%p264_p2), %s182_s24, 128  }
  0xc5   : > { %385 = vsyncadd (!%p264_p2), %s182_s24, 4294967168  ;;  %p14_p4 = scmp.ge.s32.totalorder %s442_s12, 4   ;;  %s591_s6 = smov %s392_s7 }
  0xc6   : > { %s592_s7 = smov %s396_s8  ;;  %s593_s8 = smov %s454_s15 }
  0xc7   : > { %s594_s9 = smov %s442_s12  ;;  %16 = sbr.rel (!%p14_p4) target bundleno = 5 (0x5), region = 69 }
  0xce   :  { %187 = vsyncpa [#allocation3], 1 }
  0xcf   :  { %189 = vsyncpa [#allocation3 + $0x1], 1 }
  0xd0   :  { %190 = vsyncpa [#allocation4], 1 }
  0xd1   :  { %192 = vsyncpa [#allocation4 + $0x1], 1 }

</bundles_post_ra>
